<compile_context>
chip_gen: v7x
topology: tpu7x:2x2x1
jax: 0.10.0
libtpu: 0.0.40
codegen_flags: <defaults>
</compile_context>

<pallas_src>
import functools
import math

import jax
import jax.numpy as jnp
from jax.experimental import pallas as pl
from jax.experimental.pallas import tpu as pltpu


def _rbf_kernel(d_ref, e_ref, c_ref, o_ref, *, gamma):
    """One grid step.

    d_ref: (bm, R)    f32   folded distance rows (streamed)
    e_ref: (3R, W)    bf16  stacked 0/1 expansion matrix (resident)
    c_ref: (1,  W)    f32   centers tiled R times (resident)
    o_ref: (bm, W)          lane-dense output tile (W % 128 == 0)
    """
    d = d_ref[...]                                   # (bm, R) f32

    # Exact 3-way bf16 split: d == d1 + d2 + d3 (each residual is exactly
    # representable), so the bf16 MXU expansion reproduces the f32 distances
    # to ~2^-24 relative accuracy.
    d1 = d.astype(jnp.bfloat16)
    r1 = d - d1.astype(jnp.float32)
    d2 = r1.astype(jnp.bfloat16)
    d3 = (r1 - d2.astype(jnp.float32)).astype(jnp.bfloat16)

    # One stacked K = 3R matmul on the otherwise idle MXU:
    #   d_exp[i, j] == d[i, j // bins]
    dk = jnp.concatenate([d1, d2, d3], axis=1)       # (bm, 3R) bf16
    d_exp = jnp.dot(dk, e_ref[...],
                    preferred_element_type=jnp.float32)   # (bm, W) f32

    diff = d_exp - c_ref[...]                        # broadcast (1, W) -> (bm, W)
    o_ref[...] = jnp.exp(-gamma * (diff * diff)).astype(o_ref.dtype)


def rbf_expansion(distance, centers, gamma, *, block_rows=2048,
                  out_dtype=jnp.float32):
    """distance: (N,), centers: (bins,) -> (N, bins) = exp(-gamma*(d-c)^2).

    out_dtype=jnp.bfloat16 is the fast path (halves HBM write traffic; the
    kernel is write-bound) when the downstream Linear(bins->hidden) accepts
    bf16.  Default f32 matches the torch module.
    """
    n = distance.shape[0]
    bins = centers.shape[0]

    # Fold factor R so the output lane width W = R * bins is a multiple of 128
    # (lane-dense stores).  For bins=40: R=16, W=640.
    R = 128 // math.gcd(bins, 128)
    W = R * bins

    # Pad N only to a multiple of R (<= R-1 zeros); NOT to a multiple of bm.
    n_pad = pl.cdiv(n, R) * R
    d = distance.astype(jnp.float32)
    if n_pad != n:
        d = jnp.pad(d, (0, n_pad - n))
    rows = n_pad // R
    d_folded = d.reshape(rows, R)                    # free row-major reshape

    # Pick the folded-row tile size bm:
    #   - tiny inputs: one full-extent block (always layout-legal),
    #   - medium inputs: aim for >=8 grid steps so v7x's 2 TCs both get work,
    #   - large inputs: cap at block_rows (~5 MiB f32 output block).
    block_rows16 = max(16, (block_rows // 16) * 16)
    if rows <= 128:
        bm = rows                                    # single step, full dim
    else:
        bm = min(block_rows16, max(128, pl.cdiv(rows, 8)))
        bm = ((bm + 15) // 16) * 16                  # mult of 16 (f32 & bf16 tiles)
    grid = (pl.cdiv(rows, bm),)                      # last block may be partial

    # Tiny constant operands (constant-folded under jit).
    lane = jnp.arange(W, dtype=jnp.int32)
    expand = (lane[None, :] // bins ==
              jnp.arange(R, dtype=jnp.int32)[:, None]).astype(jnp.bfloat16)  # (R, W)
    expand3 = jnp.concatenate([expand, expand, expand], axis=0)              # (3R, W)
    c_row = jnp.tile(centers.astype(jnp.float32), R).reshape(1, W)

    out = pl.pallas_call(
        # gamma is baked in as a compile-time constant; a distinct gamma
        # value triggers a recompile (fine: gamma is fixed per module config).
        functools.partial(_rbf_kernel, gamma=float(gamma)),
        out_shape=jax.ShapeDtypeStruct((rows, W), out_dtype),
        grid_spec=pltpu.PrefetchScalarGridSpec(
            num_scalar_prefetch=0,
            grid=grid,
            in_specs=[
                pl.BlockSpec((bm, R), lambda i: (i, 0)),      # distances (streamed)
                pl.BlockSpec((3 * R, W), lambda i: (0, 0)),   # expansion (resident)
                pl.BlockSpec((1, W), lambda i: (0, 0)),       # tiled centers (resident)
            ],
            out_specs=pl.BlockSpec((bm, W), lambda i: (i, 0)),
        ),
        compiler_params=pltpu.CompilerParams(
            dimension_semantics=("parallel",),                # megacore-shardable
        ),
    )(d_folded, expand3, c_row)

    out = out.reshape(rows * R, bins)                # free reshape of folded view
    if n_pad != n:
        out = out[:n]                                # extra pass only if N % R != 0
    return out


class RBFExpansionJAX:
    """Forward-only JAX/Pallas port of alignn's RBFExpansion."""

    def __init__(self, vmin=0.0, vmax=8.0, bins=40, lengthscale=None):
        self.vmin = float(vmin)
        self.vmax = float(vmax)
        self.bins = int(bins)
        self.centers = jnp.linspace(self.vmin, self.vmax, self.bins,
                                    dtype=jnp.float32)
        if lengthscale is None:
            # mean(diff(centers)) == (vmax - vmin) / (bins - 1); gamma = 1/lengthscale.
            self.lengthscale = (self.vmax - self.vmin) / (self.bins - 1)
            self.gamma = 1.0 / self.lengthscale
        else:
            # alignn uses 1/lengthscale**2 only on this branch -- kept as-is.
            self.lengthscale = float(lengthscale)
            self.gamma = 1.0 / (float(lengthscale) ** 2)

    def __call__(self, distance):
        return rbf_expansion(distance, self.centers, self.gamma)


if __name__ == "__main__":
    key = jax.random.PRNGKey(0)
    n = 256                       # number of interatomic distances (graph edges)
    module = RBFExpansionJAX(vmin=0.0, vmax=8.0, bins=40)

    distance = jax.random.uniform(key, (n,), dtype=jnp.float32,
                                  minval=0.0, maxval=8.0)

    fwd = jax.jit(module.__call__)
    out = jax.block_until_ready(fwd(distance))

    # Pure-JAX reference check.
    ref = jnp.exp(-module.gamma *
                  (distance[:, None] - module.centers[None, :]) ** 2)
    assert out.shape == (n, module.bins), out.shape
    assert bool(jnp.all(jnp.isfinite(out)))
    max_err = float(jnp.max(jnp.abs(out - ref)))
    assert max_err < 1e-5, f"max abs error {max_err}"

    print("KERNEL_OK")
</pallas_src>

<mosaic_0001>
module attributes {stable_mosaic.version = 11 : i64} {
  func.func @_rbf_kernel(%arg0: i32, %arg1: memref<16x16xf32, #tpu.memory_space<vmem>>, %arg2: memref<48x640xbf16, #tpu.memory_space<vmem>>, %arg3: memref<1x640xf32, #tpu.memory_space<vmem>>, %arg4: memref<16x640xf32, #tpu.memory_space<vmem>>) attributes {dimension_semantics = [#tpu.dimension_semantics<parallel>], iteration_bounds = array<i64: 1>, scalar_prefetch = 0 : i64, scratch_operands = 0 : i64, tpu.core_type = #tpu.core_type<tc>, window_params = [{transform_indices = @transform_0, window_bounds = array<i64: 16, 16>}, {pipeline_mode = #tpu.pipeline_mode<synchronous>, transform_indices = @transform_1, window_bounds = array<i64: 48, 640>}, {pipeline_mode = #tpu.pipeline_mode<synchronous>, transform_indices = @transform_2, window_bounds = array<i64: 1, 640>}, {transform_indices = @transform_3, window_bounds = array<i64: 16, 640>}]} {
    %c0 = arith.constant 0 : index
    %c0_0 = arith.constant 0 : index
    %0 = vector.load %arg1[%c0, %c0_0] : memref<16x16xf32, #tpu.memory_space<vmem>>, vector<16x16xf32>
    %1 = arith.truncf %0 : vector<16x16xf32> to vector<16x16xbf16>
    %2 = arith.extf %1 : vector<16x16xbf16> to vector<16x16xf32>
    %3 = arith.subf %0, %2 : vector<16x16xf32>
    %4 = arith.truncf %3 : vector<16x16xf32> to vector<16x16xbf16>
    %5 = arith.extf %4 : vector<16x16xbf16> to vector<16x16xf32>
    %6 = arith.subf %3, %5 : vector<16x16xf32>
    %7 = arith.truncf %6 : vector<16x16xf32> to vector<16x16xbf16>
    %8 = tpu.concatenate %1, %4, %7 in 1 : vector<16x16xbf16>, vector<16x16xbf16>, vector<16x16xbf16> -> vector<16x48xbf16>
    %c0_1 = arith.constant 0 : index
    %c0_2 = arith.constant 0 : index
    %9 = vector.load %arg2[%c0_1, %c0_2] : memref<48x640xbf16, #tpu.memory_space<vmem>>, vector<48x640xbf16>
    %cst = arith.constant dense<0.000000e+00> : vector<16x640xf32>
    %10 = tpu.matmul %8, %9, %cst {dimension_numbers = #tpu.dot_dimension_numbers<[1], [0], [0], [1], [0, 0, 1, 1], [], []>} : vector<16x48xbf16>, vector<48x640xbf16>, vector<16x640xf32> -> vector<16x640xf32>
    %c0_3 = arith.constant 0 : index
    %c0_4 = arith.constant 0 : index
    %11 = vector.load %arg3[%c0_3, %c0_4] : memref<1x640xf32, #tpu.memory_space<vmem>>, vector<1x640xf32>
    %12 = vector.broadcast %11 : vector<1x640xf32> to vector<16x640xf32>
    %13 = arith.subf %10, %12 : vector<16x640xf32>
    %14 = arith.mulf %13, %13 : vector<16x640xf32>
    %cst_5 = arith.constant -4.875000e+00 : f32
    %15 = vector.broadcast %cst_5 : f32 to vector<16x640xf32>
    %16 = arith.mulf %15, %14 : vector<16x640xf32>
    %17 = math.exp %16 : vector<16x640xf32>
    %c0_6 = arith.constant 0 : index
    %c0_7 = arith.constant 0 : index
    %18 = vector.load %arg4[%c0_6, %c0_7] : memref<16x640xf32, #tpu.memory_space<vmem>>, vector<16x640xf32>
    tpu.vector_store %arg4[%c0_6, %c0_7], %17 {strides = array<i32>} : memref<16x640xf32, #tpu.memory_space<vmem>>, vector<16x640xf32>,
    return
  }
  func.func @transform_0(%arg0: i32) -> (i32, i32) {
    %c0_i32 = arith.constant 0 : i32
    %c0_i32_0 = arith.constant 0 : i32
    return %arg0, %c0_i32 : i32, i32
  }
  func.func @transform_1(%arg0: i32) -> (i32, i32) {
    %c0_i32 = arith.constant 0 : i32
    %c0_i32_0 = arith.constant 0 : i32
    %c0_i32_1 = arith.constant 0 : i32
    return %c0_i32, %c0_i32_0 : i32, i32
  }
  func.func @transform_2(%arg0: i32) -> (i32, i32) {
    %c0_i32 = arith.constant 0 : i32
    %c0_i32_0 = arith.constant 0 : i32
    %c0_i32_1 = arith.constant 0 : i32
    return %c0_i32, %c0_i32_0 : i32, i32
  }
  func.func @transform_3(%arg0: i32) -> (i32, i32) {
    %c0_i32 = arith.constant 0 : i32
    %c0_i32_0 = arith.constant 0 : i32
    return %arg0, %c0_i32 : i32, i32
  }
}

</mosaic_0001>

<bundles_post_ra>
// kernel: tile.6
= control target key start
LH: loop header
LB: loop body
LE: loop exit
PB: predicated region body
PF: predicated region fallthrough
CT: control target
= control target key end

     0   :  { %s28_s0 = inlined_call_operand.vmem [shape: f32[40], index: 0, kind: input, shape index: {}]   ;;  %s29_s1 = inlined_call_operand.vmem [shape: f32[16,40], index: 1, kind: output, shape index: {}]  }
   0x1   :  { %v4_v0 = vld [vmem:[%s28_s0] ss:$0 sm:$0xff] }
   0x2   :  { %5 = vst [vmem:[%s29_s1] sm:$0xff] %v4_v0  ;;  %8 = vst [vmem:[%s29_s1 + $0x8] sm:$0xff] %v4_v0 }

// kernel: tile.7
= control target key start
LH: loop header
LB: loop body
LE: loop exit
PB: predicated region body
PF: predicated region fallthrough
CT: control target
= control target key end

     0   :  { %vm9_vm0 = vcmask 64512   ;;  %vm26_vm1 = vcmask 195584   ;;  %s205_s14 = smov 120   ;;  %vm22_vm2 = vcmask 130048   ;;  %s206_s19 = smov 104   ;;  %vm13_vm3 = vcmask 261120   ;;  %s313_s0 = inlined_call_operand.vmem [shape: f32[16,40], index: 0, kind: input, shape index: {}]   ;;  %s314_s1 = inlined_call_operand.vmem [shape: f32[1,640], index: 1, kind: output, shape index: {}]  }
   0x1   :  { %v167_v0 = vld [vmem:[%s313_s0 + $0x3] sm:$0x1]   ;;  %v171_v3 = vld [vmem:[%s313_s0 + $0x9] sm:$0x1]   ;;  %v169_v6 = vld [vmem:[%s313_s0 + $0x6] sm:$0x1]  }
   0x2   :  { %v168_v1 = vld [vmem:[%s313_s0 + $0x3] sm:$0x1]   ;;  %v172_v4 = vld [vmem:[%s313_s0 + $0x9] sm:$0x1]   ;;  %v170_v7 = vld [vmem:[%s313_s0 + $0x6] sm:$0x1]  }
   0x3   :  { %v10_v2 = vsel %vm9_vm0, %v168_v1, %v167_v0  ;;  %v37_v5 = vsel %vm26_vm1, %v172_v4, %v171_v3  ;;  %v23_v8 = vsel %vm22_vm2, %v170_v7, %v169_v6  ;;  %v173_v9 = vld [vmem:[%s313_s0 + $0xc] sm:$0x1]   ;;  %s207_s24 = smov 112   ;;  %s208_s25 = smov 96   ;;  %v175_v12 = vld [vmem:[%s313_s0 + $0xf] sm:$0x1]  }
   0x4   :  { %11 = vrot.lane.b32.xlu0 %v10_v2, %s205_s14  ;;  %38 = vrot.lane.b32.xlu1 %v37_v5, %s206_s19  ;;  %v174_v10 = vld [vmem:[%s313_s0 + $0xc] sm:$0x1]   ;;  %v176_v13 = vld [vmem:[%s313_s0 + $0x2] sm:$0x1]   ;;  %s209_s3 = smov 88   ;;  %vm3_vm4 = vcmask 326656  }
   0x5   :  { %v51_v11 = vsel %vm13_vm3, %v174_v10, %v173_v9  ;;  %v2_v14 = vld [vmem:[%s313_s0] sm:$0x1]   ;;  %s210_s4 = smov 80   ;;  %v177_v15 = vld [vmem:[%s313_s0 + $0x5] sm:$0x1]   ;;  %s211_s9 = smov 72  }
   0x6   :  { %4 = vst.msk [vmem:[#allocation0] sm:$0x1] %vm3_vm4, %v2_v14   ;;  %v178_v16 = vld [vmem:[%s313_s0 + $0x8] sm:$0x1]   ;;  %s212_s10 = smov 64   ;;  %s213_s15 = smov 56  }
   0x7   :  { %v179_v17 = vld [vmem:[%s313_s0 + $0xb] sm:$0x1]   ;;  %v180_v18 = vld [vmem:[%s313_s0 + $0xe] sm:$0x1]   ;;  %s214_s16 = smov 48   ;;  %s215_s21 = smov 40  }
   0x8   :  { %24 = vrot.lane.b32.xlu0 %v23_v8, %s207_s24  ;;  %52 = vrot.lane.b32.xlu1 %v51_v11, %s208_s25  ;;  %v181_v19 = vld [vmem:[%s313_s0 + $0x1] sm:$0x1]   ;;  %v182_v20 = vld [vmem:[%s313_s0 + $0x4] sm:$0x1]   ;;  %s216_s22 = smov 32   ;;  %s217_s27 = smov 24  }
   0x9   :  { %v183_v21 = vld [vmem:[%s313_s0 + $0x7] sm:$0x1]   ;;  %v184_v22 = vld [vmem:[%s313_s0 + $0xa] sm:$0x1]   ;;  %s218_s28 = smov 16   ;;  %vm16_vm5 = vcmask 1048512  }
   0xa   :  { %v185_v23 = vld [vmem:[%s313_s0 + $0xd] sm:$0x1]   ;;  %s219_s0 = smov 8   ;;  %vm29_vm6 = vcmask 1048448   ;;  %vm43_vm7 = vcmask 1048384   ;;  %vm57_vm8 = vcmask 1048320  }
   0xb   :  { %vm64_vm9 = vcmask 1048256   ;;  %vm71_vm10 = vcmask 982656   ;;  %vm77_vm11 = vcmask 917056   ;;  %vm84_vm12 = vcmask 851456  }
   0xc   :  { %62 = vrot.lane.b32.xlu0 %v175_v12, %s209_s3  ;;  %69 = vrot.lane.b32.xlu1 %v176_v13, %s210_s4  ;;  %vm91_vm13 = vcmask 785856   ;;  %vm98_vm14 = vcmask 720256   ;;  %vm105_vm15 = vcmask 654656  }
  0x10   :  { %75 = vrot.lane.b32.xlu0 %v177_v15, %s211_s9  ;;  %82 = vrot.lane.b32.xlu1 %v178_v16, %s212_s10 }
  0x14   :  { %89 = vrot.lane.b32.xlu0 %v179_v17, %s213_s15  ;;  %96 = vrot.lane.b32.xlu1 %v180_v18, %s214_s16 }
  0x18   :  { %103 = vrot.lane.b32.xlu0 %v181_v19, %s215_s21  ;;  %109 = vrot.lane.b32.xlu1 %v182_v20, %s216_s22 }
  0x1c   :  { %116 = vrot.lane.b32.xlu0 %v183_v21, %s217_s27  ;;  %123 = vrot.lane.b32.xlu1 %v184_v22, %s218_s28 }
  0x20   :  { %130 = vrot.lane.b32.xlu0 %v185_v23, %s219_s0 }
  0x76   :  { %v12_v24 = vpop.permute.xlu0 %11   ;;  %v39_v25 = vpop.permute.xlu1 %38  }
  0x77   :  { %15 = vst.msk [vmem:[#allocation0 + $0x8] sm:$0x1] %vm13_vm3, %v12_v24   ;;  %vm132_vm3 = vcmask 392256  }
  0x78   :  { %17 = vst.msk [vmem:[#allocation0] sm:$0x1] %vm16_vm5, %v12_v24  }
  0x79   :  { %42 = vst.msk [vmem:[#allocation0 + $0x18] sm:$0x1] %vm22_vm2, %v39_v25   ;;  %vm125_vm2 = vcmask 457856  }
  0x7a   :  { %v25_v26 = vpop.permute.xlu0 %24   ;;  %v53_v27 = vpop.permute.xlu1 %52  }
  0x7b   :  { %28 = vst.msk [vmem:[#allocation0 + $0x10] sm:$0x1] %vm26_vm1, %v25_v26   ;;  %vm118_vm1 = vcmask 523456  }
  0x7c   :  { %31 = vst.msk [vmem:[#allocation0 + $0x8] sm:$0x1] %vm29_vm6, %v25_v26  }
  0x7d   :  { %45 = vst.msk [vmem:[#allocation0 + $0x10] sm:$0x1] %vm43_vm7, %v39_v25  }
  0x7e   :  { %56 = vst.msk [vmem:[#allocation0 + $0x20] sm:$0x1] %vm9_vm0, %v53_v27   ;;  %v63_v28 = vpop.permute.xlu0 %62   ;;  %v70_v29 = vpop.permute.xlu1 %69   ;;  %vm111_vm0 = vcmask 589056  }
  0x7f   :  { %59 = vst.msk [vmem:[#allocation0 + $0x18] sm:$0x1] %vm57_vm8, %v53_v27  }
  0x80   :  { %66 = vst.msk [vmem:[#allocation0 + $0x20] sm:$0x1] %vm64_vm9, %v63_v28  }
  0x81   :  { %72 = vst.msk [vmem:[#allocation0] sm:$0x1] %vm71_vm10, %v70_v29  }
  0x82   :  { %v76_v30 = vpop.permute.xlu0 %75   ;;  %v83_v31 = vpop.permute.xlu1 %82  }
  0x83   :  { %79 = vst.msk [vmem:[#allocation0 + $0x8] sm:$0x1] %vm77_vm11, %v76_v30  }
  0x84   :  { %86 = vst.msk [vmem:[#allocation0 + $0x10] sm:$0x1] %vm84_vm12, %v83_v31  }
  0x86   :  { %v90_v32 = vpop.permute.xlu0 %89   ;;  %v97_v33 = vpop.permute.xlu1 %96  }
  0x87   :  { %93 = vst.msk [vmem:[#allocation0 + $0x18] sm:$0x1] %vm91_vm13, %v90_v32  }
  0x88   :  { %100 = vst.msk [vmem:[#allocation0 + $0x20] sm:$0x1] %vm98_vm14, %v97_v33  }
  0x8a   :  { %v104_v34 = vpop.permute.xlu0 %103   ;;  %v110_v35 = vpop.permute.xlu1 %109  }
  0x8b   :  { %106 = vst.msk [vmem:[#allocation0] sm:$0x1] %vm105_vm15, %v104_v34  }
  0x8c   :  { %113 = vst.msk [vmem:[#allocation0 + $0x8] sm:$0x1] %vm111_vm0, %v110_v35  }
  0x8e   :  { %v117_v36 = vpop.permute.xlu0 %116   ;;  %v124_v37 = vpop.permute.xlu1 %123  }
  0x8f   :  { %120 = vst.msk [vmem:[#allocation0 + $0x10] sm:$0x1] %vm118_vm1, %v117_v36  }
  0x90   :  { %127 = vst.msk [vmem:[#allocation0 + $0x18] sm:$0x1] %vm125_vm2, %v124_v37  }
  0x92   :  { %v138_v38 = vld [vmem:[#allocation0] sm:$0x1]  ;;  %v131_v39 = vpop.permute.xlu0 %130  }
  0x93   :  { %140 = vst [vmem:[%s314_s1] sm:$0x1] %v138_v38  ;;  %v142_v40 = vld [vmem:[#allocation0 + $0x8] sm:$0x1]  ;;  %134 = vst.msk [vmem:[#allocation0 + $0x20] sm:$0x1] %vm132_vm3, %v131_v39  }
  0x94   :  { %186 = vst [vmem:[%s314_s1 + $0x1] sm:$0x1] %v142_v40 }
  0x96   :  { %v147_v41 = vld [vmem:[#allocation0 + $0x10] sm:$0x1] }
  0x97   :  { %187 = vst [vmem:[%s314_s1 + $0x2] sm:$0x1] %v147_v41  ;;  %v153_v42 = vld [vmem:[#allocation0 + $0x18] sm:$0x1] }
  0x98   :  { %188 = vst [vmem:[%s314_s1 + $0x3] sm:$0x1] %v153_v42 }
  0x9a   :  { %v159_v43 = vld [vmem:[#allocation0 + $0x20] sm:$0x1] }
  0x9b   :  { %189 = vst [vmem:[%s314_s1 + $0x4] sm:$0x1] %v159_v43 }

// kernel: a_call__.1
= control target key start
LH: loop header
LB: loop body
LE: loop exit
PB: predicated region body
PF: predicated region fallthrough
CT: control target
= control target key end

     0   :  { %v436_v6 = vmov 0   ;;  %s437_s10 = smov 16   ;;  %v438_v26 = vmov 0.0   ;;  %s439_s13 = smov 32   ;;  %vm34_vm0 = vcmask 130048   ;;  %vm38_vm1 = vcmask 261120   ;;  %s548_s0 = inlined_call_operand.vmem [shape: f32[16,16], index: 0, kind: input, shape index: {}]   ;;  %s549_s1 = inlined_call_operand.vmem [shape: bf16[48,640], index: 1, kind: input, shape index: {}]   ;;  %s550_s2 = inlined_call_operand.vmem [shape: f32[1,640], index: 2, kind: input, shape index: {}]   ;;  %s551_s3 = inlined_call_operand.vmem [shape: f32[16,640], index: 3, kind: output, shape index: {}]  }
   0x1   :  { %v15_v0 = vld [vmem:[%s548_s0] sm:$0xff]  ;;  %v16_v1 = vld [vmem:[%s548_s0 + $0x8] sm:$0xff]  ;;  %172 = vmatprep.mubr.bf16.mxu0 %v436_v6  ;;  %215 = vmatprep.mubr.bf16.mxu1 %v436_v6  ;;  %v410_v19 = vld [vmem:[%s549_s1 + $0x5c] ss:$20 sps:$4 sm:$0xff]   ;;  %vm137_vm2 = vcmask 392192   ;;  %vm440_vm3 = vmmov 0   ;;  %v269_v34 = vlaneseq }
   0x2   :  { %v17_v2 = vpack.c.bf16 %v16_v1, %v15_v0  ;;  %v395_v3 = vld [vmem:[%s549_s1 + $0x4] ss:$20 sps:$4 sm:$0xff]   ;;  %v397_v4 = vld [vmem:[%s549_s1] ss:$20 sps:$4 sm:$0xff]   ;;  %v400_v9 = vld [vmem:[%s549_s1 + $0x8] ss:$20 sps:$4 sm:$0xff]  }
   0x3   :  { %v398_v5 = vld [vmem:[%s549_s1 + $0xc] ss:$20 sps:$4 sm:$0xff]   ;;  %140 = vmatprep.subr.bf16.mxu0 %v395_v3  ;;  %v403_v11 = vld [vmem:[%s549_s1 + $0x28] ss:$20 sps:$4 sm:$0xff]   ;;  %v406_v15 = vld [vmem:[%s549_s1 + $0x30] ss:$20 sps:$4 sm:$0xff]  }
   0x4   :  { %v18_v7 = vunpack.c.l.bf16 %v17_v2  ;;  %v19_v8 = vunpack.c.h.bf16 %v17_v2  ;;  %141 = vmatpush1.bf16.msra.mxu0 %v397_v4  ;;  %183 = vmatprep.subr.bf16.mxu1 %v398_v5  ;;  %v401_v10 = vld [vmem:[%s549_s1 + $0x2c] ss:$20 sps:$4 sm:$0xff]   ;;  %v404_v14 = vld [vmem:[%s549_s1 + $0x34] ss:$20 sps:$4 sm:$0xff]   ;;  %v409_v18 = vld [vmem:[%s549_s1 + $0x50] ss:$20 sps:$4 sm:$0xff]  }
   0x5   :  { %184 = vmatpush1.bf16.msra.mxu1 %v400_v9  ;;  %142 = vmatprep.subr.bf16.mxu0 %v401_v10  ;;  %v407_v16 = vld [vmem:[%s549_s1 + $0x54] ss:$20 sps:$4 sm:$0xff]   ;;  %v412_v22 = vld [vmem:[%s549_s1 + $0x58] ss:$20 sps:$4 sm:$0xff]   ;;  %v413_v28 = vld [vmem:[%s549_s1 + $0x10] ss:$20 sps:$4 sm:$0xff]  }
   0x6   :  { %v20_v12 = vsub.f32 %v15_v0, %v18_v7  ;;  %v21_v13 = vsub.f32 %v16_v1, %v19_v8  ;;  %185 = vmatprep.subr.bf16.mxu1 %v404_v14  ;;  %v414_v32 = vld [vmem:[%s549_s1 + $0x38] ss:$20 sps:$4 sm:$0xff]   ;;  %v415_v33 = vld [vmem:[%s549_s1 + $0x60] ss:$20 sps:$4 sm:$0xff]   ;;  %v270_v35 = vshrl.u32 %v269_v34, 7 }
   0x7   :  { %v267_v38 = vld [vmem:[%s550_s2] sm:$0x1f] }
   0x8   :  { %v22_v17 = vpack.c.bf16 %v21_v13, %v20_v12  ;;  %143 = vmatpush1.bf16.msra.mxu0 %v403_v11  ;;  %v271_v36 = vsub.s32 0, %v270_v35  ;;  %v279_v37 = vsub.s32 2, %v270_v35  ;;  %v275_v39 = vsub.s32 1, %v270_v35 }
   0x9   :  { %186 = vmatpush1.bf16.msra.mxu1 %v406_v15  ;;  %144 = vmatprep.subr.bf16.mxu0 %v407_v16  ;;  %v283_v40 = vsub.s32 3, %v270_v35  ;;  %v287_v55 = vsub.s32 4, %v270_v35 }
   0xa   :  { %29 = vrot.lane.b32.xlu0 %v22_v17, %s437_s10  ;;  %v23_v20 = vunpack.c.l.bf16 %v22_v17  ;;  %v24_v21 = vunpack.c.h.bf16 %v22_v17  ;;  %187 = vmatprep.subr.bf16.mxu1 %v410_v19  ;;  %v272_v41 = vrot.slane %v267_v38, %v271_v36  ;;  %v280_v42 = vrot.slane %v267_v38, %v279_v37 }
   0xb   :  { %v276_v43 = vrot.slane %v267_v38, %v275_v39  ;;  %v284_v44 = vrot.slane %v267_v38, %v283_v40  ;;  %v288_v19 = vrot.slane %v267_v38, %v287_v55 }
   0xc   :  { %v25_v23 = vsub.f32 %v20_v12, %v23_v20  ;;  %v26_v24 = vsub.f32 %v21_v13, %v24_v21  ;;  %145 = vmatpush1.bf16.msra.mxu0 %v409_v18 }
   0xd   :  { %188 = vmatpush1.bf16.msra.mxu1 %v412_v22  ;;  %380 = vmatprep.subr.bf16.mxu0 %v438_v26 }
   0xe   :  { %v27_v25 = vpack.c.bf16 %v26_v24, %v25_v23 }
  0x10   :  { %32 = vrot.lane.b32.xlu0 %v27_v25, %s439_s13 }
  0x7c   :  { %v30_v27 = vpop.permute.xlu0 %29 }
  0x7d   :  { %v37_v29 = vsel %vm34_vm0, %v17_v2, %v30_v27 }
  0x82   :  { %v33_v30 = vpop.permute.xlu0 %32 }
  0x83   :  { %v40_v31 = vsel %vm38_vm1, %v37_v29, %v33_v30 }
  0x84   :  { %373 = vmatmul.mubr.msk.bf16.vlgmr.msra.gmra.mrb[0].mxu0 %vm137_vm2, %v40_v31  ;;  %374 = vmatmul.mubr.msk.bf16.vlgmr.msra.gmra.mrb[0].mxu1 %vm137_vm2, %v40_v31 }
  0x85   :  { %381 = vmatpush3.bf16.msra.mxu0 %v413_v28  ;;  %386 = vmatprep.mubr.msk.bf16.mxu0 %vm440_vm3, %v438_v26 }
  0x86   :  { %382 = vmatprep.subr.bf16.mxu0 %v438_v26 }
  0x89   :  { %383 = vmatpush3.bf16.msra.mxu0 %v414_v32 }
  0x8a   :  { %384 = vmatprep.subr.bf16.mxu0 %v438_v26 }
  0x8d   :  { %385 = vmatpush3.bf16.msra.mxu0 %v415_v33 }
  0x90   :  { %387 = vmatmul.mubr.msk.bf16.vlgmr.msra.gmra.mrb[4].mxu0 %vm137_vm2, %v40_v31 }
 0x157   :  { %v174_v45 = vpop.f32.mrb[0].mxu0  ;;  %v217_v46 = vpop.f32.mrb[0].mxu1 }
 0x158   :  { %v294_v47 = vsub.f32 %v174_v45, %v272_v41  ;;  %v296_v48 = vsub.f32 %v217_v46, %v280_v42  ;;  %v176_v49 = vpop.f32.mrb[1].mxu0  ;;  %v219_v50 = vpop.f32.mrb[1].mxu1 }
 0x159   :  { %v295_v51 = vsub.f32 %v176_v49, %v276_v43  ;;  %v297_v52 = vsub.f32 %v219_v50, %v284_v44  ;;  %v178_v53 = vpop.f32.mrb[2].mxu0  ;;  %v221_v54 = vpop.f32.mrb[2].mxu1 }
 0x15a   :  { %v304_v56 = vmul.f32 %v294_v47, %v294_v47  ;;  %v306_v57 = vmul.f32 %v296_v48, %v296_v48  ;;  %v299_v58 = vsub.f32 %v178_v53, %v272_v41  ;;  %v301_v59 = vsub.f32 %v221_v54, %v280_v42  ;;  %v180_v60 = vpop.f32.mrb[3].mxu0  ;;  %v223_v61 = vpop.f32.mrb[3].mxu1 }
 0x15b   :  { %v305_v62 = vmul.f32 %v295_v51, %v295_v51  ;;  %v307_v63 = vmul.f32 %v297_v52, %v297_v52  ;;  %v300_v0 = vsub.f32 %v180_v60, %v276_v43  ;;  %v302_v1 = vsub.f32 %v223_v61, %v284_v44 }
 0x15c   :  { %v314_v2 = vmul.f32 -4.875, %v304_v56  ;;  %v316_v3 = vmul.f32 -4.875, %v306_v57  ;;  %v309_v4 = vmul.f32 %v299_v58, %v299_v58  ;;  %v311_v5 = vmul.f32 %v301_v59, %v301_v59 }
 0x15d   :  { %v315_v6 = vmul.f32 -4.875, %v305_v62  ;;  %v317_v7 = vmul.f32 -4.875, %v307_v63  ;;  %v310_v8 = vmul.f32 %v300_v0, %v300_v0  ;;  %v312_v9 = vmul.f32 %v302_v1, %v302_v1 }
 0x15e   :  { %v324_v10 = vmul.f32 1.442695, %v314_v2  ;;  %v328_v11 = vmul.f32 1.442695, %v316_v3  ;;  %v319_v12 = vmul.f32 -4.875, %v309_v4  ;;  %v321_v13 = vmul.f32 -4.875, %v311_v5 }
 0x15f   :  { %v326_v14 = vmul.f32 1.442695, %v315_v6  ;;  %v330_v15 = vmul.f32 1.442695, %v317_v7  ;;  %v320_v16 = vmul.f32 -4.875, %v310_v8  ;;  %v322_v17 = vmul.f32 -4.875, %v312_v9 }
 0x160   :  { %416 = vpow2.f32 %v324_v10  ;;  %v334_v18 = vmul.f32 1.442695, %v319_v12  ;;  %v338_v20 = vmul.f32 1.442695, %v321_v13 }
 0x161   :  { %418 = vpow2.f32 %v328_v11  ;;  %v336_v21 = vmul.f32 1.442695, %v320_v16  ;;  %v340_v22 = vmul.f32 1.442695, %v322_v17 }
 0x162   :  { %420 = vpow2.f32 %v326_v14 }
 0x163   :  { %422 = vpow2.f32 %v330_v15  ;;  %v260_v23 = vpop.f32.mrb[4].mxu0 }
 0x164   :  { %424 = vpow2.f32 %v334_v18  ;;  %v298_v24 = vsub.f32 %v260_v23, %v288_v19  ;;  %v388_v25 = vpop.f32.mrb[5].mxu0 }
 0x165   :  { %426 = vpow2.f32 %v338_v20  ;;  %v263_v26 = vpop.f32.mrb[6].mxu0 }
 0x166   :  { %428 = vpow2.f32 %v336_v21  ;;  %v308_v27 = vmul.f32 %v298_v24, %v298_v24  ;;  %v303_v28 = vsub.f32 %v263_v26, %v288_v19  ;;  %v389_v29 = vpop.f32.mrb[7].mxu0 }
 0x167   :  { %430 = vpow2.f32 %v340_v22 }
 0x168   :  { %v318_v30 = vmul.f32 -4.875, %v308_v27  ;;  %v313_v31 = vmul.f32 %v303_v28, %v303_v28 }
 0x16a   :  { %v417_v32 = vpop.eup %416  ;;  %v332_v33 = vmul.f32 1.442695, %v318_v30  ;;  %v323_v34 = vmul.f32 -4.875, %v313_v31 }
 0x16b   :  { %v419_v35 = vpop.eup %418  ;;  %344 = vst [vmem:[%s551_s3] sm:$0xff] %v417_v32 }
 0x16c   :  { %v421_v36 = vpop.eup %420  ;;  %346 = vst [vmem:[%s551_s3 + $0x10] sm:$0xff] %v419_v35  ;;  %432 = vpow2.f32 %v332_v33  ;;  %v342_v37 = vmul.f32 1.442695, %v323_v34 }
 0x16d   :  { %v423_v38 = vpop.eup %422  ;;  %345 = vst [vmem:[%s551_s3 + $0x8] sm:$0xff] %v421_v36 }
 0x16e   :  { %v425_v39 = vpop.eup %424  ;;  %347 = vst [vmem:[%s551_s3 + $0x18] sm:$0xff] %v423_v38  ;;  %434 = vpow2.f32 %v342_v37 }
 0x16f   :  { %v427_v40 = vpop.eup %426  ;;  %349 = vst [vmem:[%s551_s3 + $0x28] sm:$0xff] %v425_v39 }
 0x170   :  { %v429_v41 = vpop.eup %428  ;;  %351 = vst [vmem:[%s551_s3 + $0x38] sm:$0xff] %v427_v40 }
 0x171   :  { %v431_v42 = vpop.eup %430  ;;  %350 = vst [vmem:[%s551_s3 + $0x30] sm:$0xff] %v429_v41 }
 0x172   :  { %352 = vst [vmem:[%s551_s3 + $0x40] sm:$0xff] %v431_v42 }
 0x176   :  { %v433_v43 = vpop.eup %432 }
 0x177   :  { %348 = vst [vmem:[%s551_s3 + $0x20] sm:$0xff] %v433_v43 }
 0x178   :  { %v435_v44 = vpop.eup %434 }
 0x179   :  { %353 = vst [vmem:[%s551_s3 + $0x48] sm:$0xff] %v435_v44 }

</bundles_post_ra>
